<compile_context>
chip_gen: v7x
topology: tpu7x:2x2x1
jax: 0.10.0
libtpu: 0.0.40
codegen_flags: <defaults>
</compile_context>

<pallas_src>
import functools

import jax
import jax.numpy as jnp
from jax.experimental import pallas as pl
from jax.experimental.pallas import tpu as pltpu


# ----------------------------------------------------------------------------
# Pallas kernel: fused direct conv (tap-folded single matmul) + bias
#                + InstanceNorm (two-pass) + LeakyReLU
# ----------------------------------------------------------------------------
def _conv_block_kernel(x_ref, w_ref, b_ref, o_ref, *, taps, ic, oh, ow,
                       use_norm, use_act, eps=1e-5, slope=0.2):
    # x_ref: (1, Hs, Ws, Cin_eff) bf16  (Cin_eff = IC, or 4*IC for phase-split s=2)
    # w_ref: (K, OC) bf16, K = len(taps)*IC, row blocks ordered as `taps`
    # b_ref: (1, OC) f32
    # o_ref: (1, OH, OW, OC) bf16
    ohw = oh * ow
    oc = o_ref.shape[-1]

    # Fold all taps (real channel width only) into the contraction dim.
    pieces = [x_ref[:, di:di + oh, dj:dj + ow, cb * ic:(cb + 1) * ic]
              for (di, dj, cb) in taps]
    xs = jnp.concatenate(pieces, axis=-1)              # (1, OH, OW, K) bf16
    xs = xs.reshape(ohw, xs.shape[-1])                 # (OHW, K)

    # Single MXU matmul, f32 accumulation.
    y = jnp.dot(xs, w_ref[...], preferred_element_type=jnp.float32)  # (OHW, OC)
    y = y + b_ref[...]

    if use_norm:
        # InstanceNorm2d (affine=False), two-pass variance in f32.
        inv_n = 1.0 / float(ohw)
        mean = jnp.sum(y, axis=0, keepdims=True) * inv_n
        d = y - mean
        var = jnp.sum(d * d, axis=0, keepdims=True) * inv_n
        y = d * jax.lax.rsqrt(var + eps)

    if use_act:
        y = jnp.where(y > 0, y, slope * y)              # LeakyReLU(0.2)

    o_ref[...] = y.reshape(1, oh, ow, oc).astype(o_ref.dtype)


def _conv_block_pallas(x_in, w_fold, b_vec, *, taps, ic, oh, ow,
                       use_norm, use_act):
    """x_in: (N, Hs, Ws, Cin_eff) bf16, w_fold: (K, OC) bf16, b_vec: (1, OC) f32
       -> (N, OH, OW, OC) bf16, channels-last at real channel width."""
    n, hs, ws, cin = x_in.shape
    k, oc = w_fold.shape

    kernel = functools.partial(_conv_block_kernel, taps=tuple(taps), ic=ic,
                               oh=oh, ow=ow, use_norm=use_norm, use_act=use_act)

    # VMEM budget: double-buffered in/out sample tiles, weights (double-buffered
    # by default), in-kernel folded operand + f32 result, plus slack.
    in_bytes = hs * ws * cin * 2
    out_bytes = oh * ow * oc * 2
    w_bytes = k * oc * 2 + oc * 4
    tmp_bytes = oh * ow * (k * 2 + oc * 4)
    needed = 2 * (in_bytes + out_bytes) + 2 * w_bytes + tmp_bytes + (8 << 20)
    try:
        cap = int(pltpu.get_tpu_info().vmem_capacity_bytes)
    except Exception:
        cap = 64 << 20  # conservative (v7x per-TensorCore capacity)
    budget = (cap * 3) // 4
    vmem_limit = int(max(32 << 20, min(needed, budget)))

    flops = 2 * n * oh * ow * k * oc
    bytes_accessed = n * (in_bytes + out_bytes) + w_bytes

    return pl.pallas_call(
        kernel,
        out_shape=jax.ShapeDtypeStruct((n, oh, ow, oc), jnp.bfloat16),
        grid_spec=pltpu.PrefetchScalarGridSpec(
            num_scalar_prefetch=0,
            grid=(n,),
            in_specs=[
                pl.BlockSpec((1, hs, ws, cin), lambda bi: (bi, 0, 0, 0)),
                pl.BlockSpec((k, oc), lambda bi: (0, 0)),
                pl.BlockSpec((1, oc), lambda bi: (0, 0)),
            ],
            out_specs=pl.BlockSpec((1, oh, ow, oc), lambda bi: (bi, 0, 0, 0)),
        ),
        compiler_params=pltpu.CompilerParams(
            dimension_semantics=("parallel",),
            vmem_limit_bytes=vmem_limit),
        cost_estimate=pl.CostEstimate(flops=int(flops), transcendentals=0,
                                      bytes_accessed=int(bytes_accessed)),
    )(x_in, w_fold, b_vec)


# ----------------------------------------------------------------------------
# PatchDiscriminator parameters (PyTorch OIHW layout) and forward
# ----------------------------------------------------------------------------
def patch_discriminator_params(key, input_ch, n_df):
    """Deterministic synthetic parameters. Conv weights in PyTorch OIHW layout."""
    # (out_ch, in_ch, kh, kw, stride, pad, use_norm, use_act)
    cfg = [
        (n_df,     input_ch, 3, 3, 2, 1, False, True),
        (2 * n_df, n_df,     3, 3, 2, 1, True,  True),
        (4 * n_df, 2 * n_df, 3, 3, 2, 1, True,  True),
        (8 * n_df, 4 * n_df, 3, 3, 1, 1, True,  True),
        (1,        8 * n_df, 4, 4, 1, 1, False, False),
    ]
    params = []
    for (oc, ic, kh, kw, stride, pad, use_norm, use_act) in cfg:
        key, kw_key, kb_key = jax.random.split(key, 3)
        w = jax.random.normal(kw_key, (oc, ic, kh, kw), jnp.float32) * 0.1
        b = jax.random.normal(kb_key, (oc,), jnp.float32) * 0.1
        params.append(dict(w=w, b=b, stride=stride, pad=pad,
                           use_norm=use_norm, use_act=use_act))
    return params


def patch_discriminator_forward(x, params):
    """x: (N, C, H, W) float32. Returns list of 5 block outputs (NCHW, f32)."""
    n = x.shape[0]
    # One-time NCHW -> NHWC conversion; inter-layer activations in bf16,
    # real channel width (no padding to 128 in HBM).
    h_act = jnp.transpose(x, (0, 2, 3, 1)).astype(jnp.bfloat16)
    cur_h, cur_w = x.shape[2], x.shape[3]

    outputs = []
    for p in params:
        wgt, b = p["w"], p["b"]
        oc, ic, kh, kw = wgt.shape
        stride, pad = p["stride"], p["pad"]
        assert stride in (1, 2)
        oh = (cur_h + 2 * pad - kh) // stride + 1
        ow = (cur_w + 2 * pad - kw) // stride + 1

        if stride == 1:
            # Halo pad only; every in-kernel tap load is a contiguous slice.
            x_in = jnp.pad(h_act, ((0, 0), (pad, pad), (pad, pad), (0, 0)))
            taps = [(i, j, 0) for i in range(kh) for j in range(kw)]
            cin_eff = ic
        else:
            # stride == 2: space-to-depth phase split so the kernel never needs
            # strided loads.  Phase (p,q) lives in channel block p*2+q.
            assert kh == 3 and kw == 3
            hp_use, wp_use = 2 * (oh + 1), 2 * (ow + 1)
            eh = hp_use - (cur_h + 2 * pad)
            ew = wp_use - (cur_w + 2 * pad)
            assert eh >= 0 and ew >= 0
            x_pad = jnp.pad(h_act, ((0, 0), (pad, pad + eh), (pad, pad + ew), (0, 0)))
            x_in = x_pad.reshape(n, oh + 1, 2, ow + 1, 2, ic)
            x_in = x_in.transpose(0, 1, 3, 2, 4, 5).reshape(n, oh + 1, ow + 1, 4 * ic)
            taps = [(i // 2, j // 2, (i % 2) * 2 + (j % 2))
                    for i in range(kh) for j in range(kw)]
            cin_eff = 4 * ic
        assert x_in.shape[-1] == cin_eff

        # OIHW -> (KH, KW, IC, OC) -> (KH*KW*IC, OC), tap-major rows (matches
        # the in-kernel concat order), bf16 operands.
        w_fold = jnp.transpose(wgt, (2, 3, 1, 0)).reshape(kh * kw * ic, oc)
        w_fold = w_fold.astype(jnp.bfloat16)
        b_vec = b.reshape(1, oc).astype(jnp.float32)

        y = _conv_block_pallas(x_in, w_fold, b_vec, taps=taps, ic=ic, oh=oh,
                               ow=ow, use_norm=p["use_norm"],
                               use_act=p["use_act"])       # (N, OH, OW, OC) bf16

        # Returned feature maps in NCHW f32 (PyTorch layout); the next layer
        # consumes the channels-last bf16 activation directly.
        outputs.append(jnp.transpose(y.astype(jnp.float32), (0, 3, 1, 2)))
        h_act = y
        cur_h, cur_w = oh, ow
    return outputs


# ----------------------------------------------------------------------------
# Pure-JAX references (for correctness check)
# ----------------------------------------------------------------------------
def _ref_forward(x, params, *, match_bf16):
    outs = []
    h = x.astype(jnp.float32)
    for p in params:
        w = p["w"]
        if match_bf16:
            h_in = h.astype(jnp.bfloat16).astype(jnp.float32)
            w = w.astype(jnp.bfloat16).astype(jnp.float32)
        else:
            h_in = h
        y = jax.lax.conv_general_dilated(
            h_in, w, (p["stride"], p["stride"]),
            [(p["pad"], p["pad"]), (p["pad"], p["pad"])],
            dimension_numbers=("NCHW", "OIHW", "NCHW"),
            preferred_element_type=jnp.float32)
        y = y + p["b"][None, :, None, None]
        if p["use_norm"]:
            mean = y.mean(axis=(2, 3), keepdims=True)
            var = ((y - mean) ** 2).mean(axis=(2, 3), keepdims=True)
            y = (y - mean) * jax.lax.rsqrt(var + 1e-5)
        if p["use_act"]:
            y = jnp.where(y > 0, y, 0.2 * y)
        if match_bf16:
            y = y.astype(jnp.bfloat16).astype(jnp.float32)
        outs.append(y)
        h = y
    return outs


if __name__ == "__main__":
    key = jax.random.PRNGKey(0)
    k_params, k_x = jax.random.split(key)

    input_ch, n_df = 4, 8            # opt.input_ch, opt.n_df (small synthetic)
    x = jax.random.normal(k_x, (2, input_ch, 16, 16), jnp.float32)

    params = patch_discriminator_params(k_params, input_ch, n_df)

    outs = patch_discriminator_forward(x, params)
    outs = [jax.block_until_ready(o) for o in outs]

    refs_bf16 = _ref_forward(x, params, match_bf16=True)   # same bf16 casts as kernel
    refs_f32 = _ref_forward(x, params, match_bf16=False)   # exact PyTorch semantics
    for o, rb, rf in zip(outs, refs_bf16, refs_f32):
        assert o.shape == rb.shape, (o.shape, rb.shape)
        assert bool(jnp.allclose(o, rb, rtol=2e-2, atol=2e-2)), \
            float(jnp.max(jnp.abs(o - rb)))
        assert bool(jnp.allclose(o, rf, rtol=1e-1, atol=1e-1)), \
            float(jnp.max(jnp.abs(o - rf)))

    print("KERNEL_OK")
</pallas_src>

<mosaic_0001>
module attributes {stable_mosaic.version = 11 : i64} {
  func.func @_conv_block_kernel(%arg0: i32, %arg1: memref<1x9x9x16xbf16, #tpu.memory_space<vmem>>, %arg2: memref<36x8xbf16, #tpu.memory_space<vmem>>, %arg3: memref<1x8xf32, #tpu.memory_space<vmem>>, %arg4: memref<1x8x8x8xbf16, #tpu.memory_space<vmem>>) attributes {dimension_semantics = [#tpu.dimension_semantics<parallel>], iteration_bounds = array<i64: 2>, scalar_prefetch = 0 : i64, scratch_operands = 0 : i64, tpu.core_type = #tpu.core_type<tc>, window_params = [{transform_indices = @transform_0, window_bounds = array<i64: 1, 9, 9, 16>}, {pipeline_mode = #tpu.pipeline_mode<synchronous>, transform_indices = @transform_1, window_bounds = array<i64: 36, 8>}, {pipeline_mode = #tpu.pipeline_mode<synchronous>, transform_indices = @transform_2, window_bounds = array<i64: 1, 8>}, {transform_indices = @transform_3, window_bounds = array<i64: 1, 8, 8, 8>}]} {
    %c0 = arith.constant 0 : index
    %c0_0 = arith.constant 0 : index
    %c0_1 = arith.constant 0 : index
    %c0_2 = arith.constant 0 : index
    %0 = vector.load %arg1[%c0, %c0_0, %c0_1, %c0_2] : memref<1x9x9x16xbf16, #tpu.memory_space<vmem>>, vector<1x8x8x4xbf16>
    %c0_3 = arith.constant 0 : index
    %c0_4 = arith.constant 0 : index
    %c0_5 = arith.constant 0 : index
    %c4 = arith.constant 4 : index
    %1 = vector.load %arg1[%c0_3, %c0_4, %c0_5, %c4] : memref<1x9x9x16xbf16, #tpu.memory_space<vmem>>, vector<1x8x8x4xbf16>
    %c0_6 = arith.constant 0 : index
    %c0_7 = arith.constant 0 : index
    %c1 = arith.constant 1 : index
    %c0_8 = arith.constant 0 : index
    %2 = vector.load %arg1[%c0_6, %c0_7, %c1, %c0_8] : memref<1x9x9x16xbf16, #tpu.memory_space<vmem>>, vector<1x8x8x4xbf16>
    %c0_9 = arith.constant 0 : index
    %c0_10 = arith.constant 0 : index
    %c0_11 = arith.constant 0 : index
    %c8 = arith.constant 8 : index
    %3 = vector.load %arg1[%c0_9, %c0_10, %c0_11, %c8] : memref<1x9x9x16xbf16, #tpu.memory_space<vmem>>, vector<1x8x8x4xbf16>
    %c0_12 = arith.constant 0 : index
    %c0_13 = arith.constant 0 : index
    %c0_14 = arith.constant 0 : index
    %c12 = arith.constant 12 : index
    %4 = vector.load %arg1[%c0_12, %c0_13, %c0_14, %c12] : memref<1x9x9x16xbf16, #tpu.memory_space<vmem>>, vector<1x8x8x4xbf16>
    %c0_15 = arith.constant 0 : index
    %c0_16 = arith.constant 0 : index
    %c1_17 = arith.constant 1 : index
    %c8_18 = arith.constant 8 : index
    %5 = vector.load %arg1[%c0_15, %c0_16, %c1_17, %c8_18] : memref<1x9x9x16xbf16, #tpu.memory_space<vmem>>, vector<1x8x8x4xbf16>
    %c0_19 = arith.constant 0 : index
    %c1_20 = arith.constant 1 : index
    %c0_21 = arith.constant 0 : index
    %c0_22 = arith.constant 0 : index
    %6 = vector.load %arg1[%c0_19, %c1_20, %c0_21, %c0_22] : memref<1x9x9x16xbf16, #tpu.memory_space<vmem>>, vector<1x8x8x4xbf16>
    %c0_23 = arith.constant 0 : index
    %c1_24 = arith.constant 1 : index
    %c0_25 = arith.constant 0 : index
    %c4_26 = arith.constant 4 : index
    %7 = vector.load %arg1[%c0_23, %c1_24, %c0_25, %c4_26] : memref<1x9x9x16xbf16, #tpu.memory_space<vmem>>, vector<1x8x8x4xbf16>
    %c0_27 = arith.constant 0 : index
    %c1_28 = arith.constant 1 : index
    %c1_29 = arith.constant 1 : index
    %c0_30 = arith.constant 0 : index
    %8 = vector.load %arg1[%c0_27, %c1_28, %c1_29, %c0_30] : memref<1x9x9x16xbf16, #tpu.memory_space<vmem>>, vector<1x8x8x4xbf16>
    %9 = tpu.concatenate %0, %1, %2, %3, %4, %5, %6, %7, %8 in 3 : vector<1x8x8x4xbf16>, vector<1x8x8x4xbf16>, vector<1x8x8x4xbf16>, vector<1x8x8x4xbf16>, vector<1x8x8x4xbf16>, vector<1x8x8x4xbf16>, vector<1x8x8x4xbf16>, vector<1x8x8x4xbf16>, vector<1x8x8x4xbf16> -> vector<1x8x8x36xbf16>
    %10 = vector.shape_cast %9 : vector<1x8x8x36xbf16> to vector<64x36xbf16>
    %c0_31 = arith.constant 0 : index
    %c0_32 = arith.constant 0 : index
    %11 = vector.load %arg2[%c0_31, %c0_32] : memref<36x8xbf16, #tpu.memory_space<vmem>>, vector<36x8xbf16>
    %cst = arith.constant dense<0.000000e+00> : vector<64x8xf32>
    %12 = tpu.matmul %10, %11, %cst {dimension_numbers = #tpu.dot_dimension_numbers<[1], [0], [0], [1], [0, 0, 1, 1], [], []>} : vector<64x36xbf16>, vector<36x8xbf16>, vector<64x8xf32> -> vector<64x8xf32>
    %c0_33 = arith.constant 0 : index
    %c0_34 = arith.constant 0 : index
    %13 = vector.load %arg3[%c0_33, %c0_34] : memref<1x8xf32, #tpu.memory_space<vmem>>, vector<1x8xf32>
    %14 = vector.broadcast %13 : vector<1x8xf32> to vector<64x8xf32>
    %15 = arith.addf %12, %14 : vector<64x8xf32>
    %cst_35 = arith.constant 0.000000e+00 : f32
    %16 = vector.broadcast %cst_35 : f32 to vector<64x8xf32>
    %17 = arith.cmpf ogt, %15, %16 : vector<64x8xf32>
    %cst_36 = arith.constant 2.000000e-01 : f32
    %18 = vector.broadcast %cst_36 : f32 to vector<64x8xf32>
    %19 = arith.mulf %18, %15 : vector<64x8xf32>
    %20 = arith.select %17, %15, %19 : vector<64x8xi1>, vector<64x8xf32>
    %21 = vector.shape_cast %20 : vector<64x8xf32> to vector<1x8x8x8xf32>
    %22 = arith.truncf %21 : vector<1x8x8x8xf32> to vector<1x8x8x8xbf16>
    %c0_37 = arith.constant 0 : index
    %c0_38 = arith.constant 0 : index
    %c0_39 = arith.constant 0 : index
    %c0_40 = arith.constant 0 : index
    %23 = vector.load %arg4[%c0_37, %c0_38, %c0_39, %c0_40] : memref<1x8x8x8xbf16, #tpu.memory_space<vmem>>, vector<1x8x8x8xbf16>
    tpu.vector_store %arg4[%c0_37, %c0_38, %c0_39, %c0_40], %22 {strides = array<i32>} : memref<1x8x8x8xbf16, #tpu.memory_space<vmem>>, vector<1x8x8x8xbf16>,
    return
  }
  func.func @transform_0(%arg0: i32) -> (i32, i32, i32, i32) {
    %c0_i32 = arith.constant 0 : i32
    %c0_i32_0 = arith.constant 0 : i32
    %c0_i32_1 = arith.constant 0 : i32
    %c0_i32_2 = arith.constant 0 : i32
    return %arg0, %c0_i32, %c0_i32_0, %c0_i32_1 : i32, i32, i32, i32
  }
  func.func @transform_1(%arg0: i32) -> (i32, i32) {
    %c0_i32 = arith.constant 0 : i32
    %c0_i32_0 = arith.constant 0 : i32
    %c0_i32_1 = arith.constant 0 : i32
    return %c0_i32, %c0_i32_0 : i32, i32
  }
  func.func @transform_2(%arg0: i32) -> (i32, i32) {
    %c0_i32 = arith.constant 0 : i32
    %c0_i32_0 = arith.constant 0 : i32
    %c0_i32_1 = arith.constant 0 : i32
    return %c0_i32, %c0_i32_0 : i32, i32
  }
  func.func @transform_3(%arg0: i32) -> (i32, i32, i32, i32) {
    %c0_i32 = arith.constant 0 : i32
    %c0_i32_0 = arith.constant 0 : i32
    %c0_i32_1 = arith.constant 0 : i32
    %c0_i32_2 = arith.constant 0 : i32
    return %arg0, %c0_i32, %c0_i32_0, %c0_i32_1 : i32, i32, i32, i32
  }
}

</mosaic_0001>

<bundles_post_ra>
// kernel: tpu_custom_call.1
= control target key start
LH: loop header
LB: loop body
LE: loop exit
PB: predicated region body
PF: predicated region fallthrough
CT: control target
= control target key end

     0   :  { %8 = vsyncpa [#allocation3], 0  ;;  %s1442_s0 = inlined_call_operand.vmem [shape: bf16[2,9,9,16], index: 0, kind: input, shape index: {}]   ;;  %s1443_s1 = inlined_call_operand.vmem [shape: bf16[36,8], index: 1, kind: input, shape index: {}]   ;;  %s1444_s2 = inlined_call_operand.vmem [shape: f32[1,8], index: 2, kind: input, shape index: {}]   ;;  %s1445_s3 = inlined_call_operand.hbm [shape: bf16[2,8,8,8], index: 3, kind: output, shape index: {}]  }
   0x1   :  { %10 = vsyncpa [#allocation3 + $0x1], 0  ;;  %s1121_s12 = smov 0   ;;  %s1123_s13 = smov 0  }
   0x2   :  { %s1125_s14 = smov 0   ;;  %s1127_s15 = smov 0  }
   0x3 LB: > { %s1142_s16 = sadd.s32 4294967295, %s1092_s15   ;;  %s848_s17 = sadd.s32 4294967294, %s1092_s15   ;;  %s1092_s15 = sphi %s1127_s15, %s1451_s15   ;;  %s1088_s14 = sphi %s1125_s14, %s1450_s14   ;;  %s1084_s13 = sphi %s1123_s13, %s1449_s13   ;;  %s1080_s12 = sphi %s1121_s12, %s1448_s12  }
   0x4   : > { %s1146_s18 = sadd.s32 1, %s1092_s15   ;;  %s91_s19 = sadd.s32 1, %s1088_s14 }
   0x5   : > { %s88_s20 = ssub.s32 %s1092_s15, %s1146_s18  ;;  %p101_p0 = scmp.ne.s32.totalorder %s1088_s14, %s1084_s13 }
   0x6   : > { %p89_p1 = scmp.eq.s32.totalorder %s88_s20, 0  ;;  %p102_p2 = scmp.eq.s32.totalorder %s1142_s16, 1 }
   0x7   : > { %p107_p3 = scmp.ne.s32.totalorder %s1084_s13, %s1080_s12  ;;  %p108_p4 = scmp.eq.s32.totalorder %s848_s17, 1 }
   0x8   : > { %s1157_s21 = scalar_select %p89_p1, %s1088_s14, %s91_s19  }
   0x9   : > { %p1159_p5 = por %p102_p2, %p101_p0  ;;  %p1163_p6 = por %p108_p4, %p107_p3 }
   0xa   : > { %p851_p7 = scmp.ge.s32.totalorder %s1092_s15, 1  ;;  %p140_p8 = scmp.lt.s32.totalorder %s1092_s15, 3 }
   0xc   : > { %p141_p9 = pnand %p851_p7, %p140_p8 }
   0xd   : > { %p164_p10 = scmp.lt.s32.totalorder (!%p141_p9), %s1142_s16, 1  ;;  %s1094_s29 = smov (!%p141_p9), 4   ;;  %vm662_vm0 = vcmask (!%p141_p9), 1041408   ;;  %vm499_vm1 = vcmask (!%p141_p9), 64512   ;;  %vm516_vm2 = vcmask (!%p141_p9), 97280   ;;  %vm533_vm3 = vcmask (!%p141_p9), 130048  }
   0xe   : > { %144 = sbr.rel (%p141_p9) target bundleno = 466 (0x1d2), region = 32  ;;  %s1095_s30 = smov (!%p141_p9), 8   ;;  %vm542_vm4 = vcmask (!%p141_p9), 162816   ;;  %vm559_vm5 = vcmask (!%p141_p9), 195584   ;;  %vm576_vm6 = vcmask (!%p141_p9), 228352   ;;  %vm585_vm7 = vcmask (!%p141_p9), 261120  }
   0xf   : > { %s1096_s4 = smov (!%p141_p9), 12   ;;  %s1097_s5 = smov (!%p141_p9), 24   ;;  %vm649_vm8 = vcmask (!%p141_p9), 293888   ;;  %vm763_vm10 = vcmask (!%p141_p9), 60416  }
  0x10   : > { %s1098_s17 = smov (!%p141_p9), 32   ;;  %s919_s27 = sshll.u32 (!%p141_p9), %s1142_s16, 9 }
  0x11   : > { %s1099_s7 = smov (!%p141_p9), [#allocation2]  }
  0x12   : > { %s1034_s8 = sshll.u32 (!%p141_p9), %s1099_s7, 4  ;;  %s1035_s8 = int_to_ptr.vmem [resolvable:$false] %s1034_s8 }
  0x13   : > { %s1036_s9 = scalar_lea.vmem (!%p141_p9), %s1035_s8, 1024 }
  0x15   : > { %s165_s24 = scalar_select %p164_p10, %s1142_s16, 1 }
  0x16   : > { %s1388_s16 = scalar_lea.hbm %s1445_s3, %s919_s27 }
  0x17   : > { %s949_s25 = smul.u32 72, %s165_s24  ;;  %s161_s24 = sand.u32 1, %s1084_s13  }
  0x19   : > { %s1174_s28 = scalar_lea.vmem %s1442_s0, %s949_s25  ;;  %s852_s25 = sshll.u32 %s161_s24, 5 }
  0x1a   : > { %v1177_v0 = vld [vmem:[%s1174_s28 + $0x8] sm:$0xf]  ;;  %v179_v1 = vld [vmem:[%s1174_s28 + $0xc] sm:$0x1]  ;;  %v1181_v2 = vld [vmem:[%s1174_s28] sm:$0xf] }
  0x1b   : > { %v879_v3 = vcombine.low %v1177_v0, %v1177_v0  ;;  %v871_v4 = vcombine.low %v1177_v0, %v179_v1  ;;  %v178_v5 = vld [vmem:[%s1174_s28 + $0x4] sm:$0x1]  ;;  %v878_v6 = vcombine.low %v1181_v2, %v1181_v2  ;;  %v1190_v7 = vld [vmem:[%s1174_s28 + $0x20] sm:$0xf]  ;;  %v1196_v11 = vld [vmem:[%s1174_s28 + $0x28] sm:$0xf] }
  0x1c   : > { %v182_v8 = vld [vmem:[%s1174_s28 + $0x24] sm:$0x1]  ;;  %v870_v9 = vcombine.low %v1181_v2, %v178_v5  ;;  %v183_v12 = vld [vmem:[%s1174_s28 + $0x2c] sm:$0x1]  ;;  %v1200_v13 = vld [vmem:[%s1174_s28 + $0x18] sm:$0xf]  ;;  %v883_v58 = vcombine.low %v1196_v11, %v1196_v11  ;;  %v882_v59 = vcombine.low %v1190_v7, %v1190_v7 }
  0x1d   : > { %v874_v10 = vcombine.low %v1190_v7, %v182_v8  ;;  %325 = vrot.lane.b32.xlu1 %v879_v3, %s1094_s29  ;;  %323 = vrot.lane.b32.xlu0 %v878_v6, %s1094_s29  ;;  %v875_v14 = vcombine.low %v1196_v11, %v183_v12  ;;  %v251_v15 = vshrl.u32 %v871_v4, 16  ;;  %v253_v16 = vshll.u32 %v871_v4, 16  ;;  %v181_v17 = vld [vmem:[%s1174_s28 + $0x1c] sm:$0x1]  ;;  %v1207_v18 = vld [vmem:[%s1174_s28 + $0x10] sm:$0xf] }
  0x1e   : > { %v244_v21 = vshrl.u32 %v870_v9, 16  ;;  %v246_v22 = vshll.u32 %v870_v9, 16  ;;  %v180_v23 = vld [vmem:[%s1174_s28 + $0x14] sm:$0x1]  ;;  %v873_v27 = vcombine.low %v1200_v13, %v181_v17  ;;  %v1212_v28 = vld [vmem:[%s1174_s28 + $0x38] sm:$0xf]  ;;  %v881_v60 = vcombine.low %v1200_v13, %v1200_v13 }
  0x1f   : > { %v272_v19 = vshrl.u32 %v874_v10, 16  ;;  %v274_v20 = vshll.u32 %v874_v10, 16  ;;  %v279_v24 = vshrl.u32 %v875_v14, 16  ;;  %v281_v25 = vshll.u32 %v875_v14, 16  ;;  %v185_v32 = vld [vmem:[%s1174_s28 + $0x3c] sm:$0x1] }
  0x20   : > { %v255_v26 = vrot.slane %v253_v16, 1  ;;  %v248_v30 = vrot.slane %v246_v22, 1  ;;  %v872_v31 = vcombine.low %v1207_v18, %v180_v23  ;;  %v1217_v33 = vld [vmem:[%s1174_s28 + $0x30] sm:$0xf]  ;;  %v267_v35 = vshll.u32 %v873_v27, 16  ;;  %s1371_s26 = scalar_lea.vmem [#allocation2], %s852_s25 }
  0x21   : > { %v276_v29 = vrot.slane %v274_v20, 1  ;;  %v283_v34 = vrot.slane %v281_v25, 1  ;;  %v184_v36 = vld [vmem:[%s1174_s28 + $0x34] sm:$0x1]  ;;  %v265_v40 = vshrl.u32 %v873_v27, 16  ;;  %v877_v42 = vcombine.low %v1212_v28, %v185_v32  ;;  %v1027_v20 = vld [vmem:[%s1443_s1] sm:$0xff]  }
  0x22   : > { %v249_v38 = vor.u32 %v248_v30, %v244_v21  ;;  %v260_v39 = vshll.u32 %v872_v31, 16  ;;  %v269_v41 = vrot.slane %v267_v35, 1  ;;  %v876_v43 = vcombine.low %v1217_v33, %v184_v36  ;;  %v855_v1 = vld [vmem:[%s1174_s28 + $0x10] sm:$0xf]  ;;  %v854_v3 = vld [vmem:[%s1174_s28 + $0x8] sm:$0xf]  ;;  %927 = vmatprep.subr.bf16.mxu0 %v1027_v20  ;;  %941 = vmatprep.subr.bf16.mxu1 %v1027_v20 }
  0x23   : > { %v277_v37 = vor.u32 %v276_v29, %v272_v19  ;;  %v284_v44 = vor.u32 %v283_v34, %v279_v24  ;;  %v256_v45 = vor.u32 %v255_v26, %v251_v15  ;;  %v258_v46 = vshrl.u32 %v872_v31, 16  ;;  %v863_v4 = vld [vmem:[%s1174_s28 + $0x14] sm:$0x1]  ;;  %v862_v8 = vld [vmem:[%s1174_s28 + $0xc] sm:$0x1]  ;;  %928 = vmatpush3.bf16.msra.mxu0 %v1027_v20  ;;  %944 = vmatpush3.bf16.msra.mxu1 %v1027_v20 }
  0x24   : > { %299 = vrot.lane.b32.xlu0 %v249_v38, %s1095_s30  ;;  %v262_v47 = vrot.slane %v260_v39, 1  ;;  %v295_v48 = vshll.u32 %v877_v42, 16  ;;  %v288_v49 = vshll.u32 %v876_v43, 16  ;;  %v270_v50 = vor.u32 %v269_v41, %v265_v40  ;;  %v859_v9 = vld [vmem:[%s1174_s28 + $0x30] sm:$0xf]  ;;  %v1028_v29 = vld [vmem:[%s1443_s1 + $0x8] sm:$0xff]  }
  0x25   : > { %307 = vrot.lane.b32.xlu1 %v277_v37, %s1095_s30  ;;  %v293_v51 = vshrl.u32 %v877_v42, 16  ;;  %v286_v54 = vshrl.u32 %v876_v43, 16  ;;  %v880_v61 = vcombine.low %v1207_v18, %v1207_v18  ;;  %v885_v62 = vcombine.low %v1212_v28, %v1212_v28  ;;  %v858_v10 = vld [vmem:[%s1174_s28 + $0x28] sm:$0xf]  ;;  %v867_v14 = vld [vmem:[%s1174_s28 + $0x34] sm:$0x1]  ;;  %929 = vmatprep.subr.bf16.mxu0 %v1028_v29 }
  0x26   : > { %v263_v52 = vor.u32 %v262_v47, %v258_v46  ;;  %v297_v53 = vrot.slane %v295_v48, 1  ;;  %v290_v55 = vrot.slane %v288_v49, 1  ;;  %v884_v63 = vcombine.low %v1217_v33, %v1217_v33  ;;  %v866_v17 = vld [vmem:[%s1174_s28 + $0x2c] sm:$0x1]  ;;  %v857_v21 = vld [vmem:[%s1174_s28 + $0x20] sm:$0xf]  ;;  %942 = vmatprep.subr.bf16.mxu1 %v1028_v29 }
  0x27   : > { %v887_v5 = vcombine.low %v855_v1, %v855_v1  ;;  %v886_v6 = vcombine.low %v854_v3, %v854_v3  ;;  %v1246_v12 = vcombine.low %v855_v1, %v863_v4  ;;  %v894_v15 = vcombine.low %v854_v3, %v862_v8  ;;  %v856_v22 = vld [vmem:[%s1174_s28 + $0x18] sm:$0xf]  ;;  %v865_v23 = vld [vmem:[%s1174_s28 + $0x24] sm:$0x1]  ;;  %v864_v26 = vld [vmem:[%s1174_s28 + $0x1c] sm:$0x1]  ;;  %930 = vmatpush3.bf16.msra.mxu0 %v1028_v29 }
  0x28   : > { %301 = vrot.lane.b32.xlu0 %v256_v45, %s1095_s30  ;;  %v298_v56 = vor.u32 %v297_v53, %v293_v51  ;;  %v291_v57 = vor.u32 %v290_v55, %v286_v54  ;;  %v891_v16 = vcombine.low %v859_v9, %v859_v9  ;;  %v890_v19 = vcombine.low %v858_v10, %v858_v10  ;;  %v861_v27 = vld [vmem:[%s1174_s28 + $0x40] sm:$0xf]  ;;  %v860_v32 = vld [vmem:[%s1174_s28 + $0x38] sm:$0xf]  ;;  %v868_v40 = vld [vmem:[%s1174_s28 + $0x3c] sm:$0x1] }
  0x29   : > { %309 = vrot.lane.b32.xlu1 %v284_v44, %s1095_s30  ;;  %v899_v24 = vcombine.low %v859_v9, %v867_v14  ;;  %v898_v25 = vcombine.low %v858_v10, %v866_v17  ;;  %v889_v30 = vcombine.low %v857_v21, %v857_v21  ;;  %v888_v31 = vcombine.low %v856_v22, %v856_v22 }
  0x2a   : > { %v429_v34 = vshll.u32 %v1246_v12, 16  ;;  %v422_v35 = vshll.u32 %v894_v15, 16  ;;  %v897_v36 = vcombine.low %v857_v21, %v865_v23  ;;  %v893_v39 = vcombine.low %v861_v27, %v861_v27  ;;  %945 = vmatpush3.bf16.msra.mxu1 %v1028_v29 }
  0x2b   : > { %v892_v41 = vcombine.low %v860_v32, %v860_v32  ;;  %v427_v42 = vshrl.u32 %v1246_v12, 16  ;;  %v457_v43 = vshll.u32 %v899_v24, 16  ;;  %v420_v46 = vshrl.u32 %v894_v15, 16 }
  0x2c   : > { %303 = vrot.lane.b32.xlu0 %v263_v52, %s1095_s30  ;;  %v424_v47 = vrot.slane %v422_v35, 1  ;;  %v450_v48 = vshll.u32 %v898_v25, 16  ;;  %v448_v54 = vshrl.u32 %v898_v25, 16  ;;  %v443_v55 = vshll.u32 %v897_v36, 16 }
  0x2d   : > { %305 = vrot.lane.b32.xlu1 %v270_v50, %s1095_s30  ;;  %v459_v53 = vrot.slane %v457_v43, 1 }
  0x30   : > { %311 = vrot.lane.b32.xlu0 %v291_v57, %s1095_s30 }
  0x31   : > { %313 = vrot.lane.b32.xlu1 %v298_v56, %s1095_s30 }
  0x34   : > { %331 = vrot.lane.b32.xlu0 %v882_v59, %s1094_s29 }
  0x35   : > { %333 = vrot.lane.b32.xlu1 %v883_v58, %s1094_s29  ;;  %v452_v58 = vrot.slane %v450_v48, 1 }
  0x37   : > { %v453_v1 = vor.u32 %v452_v58, %v448_v54 }
  0x38   : > { %327 = vrot.lane.b32.xlu0 %v880_v61, %s1094_s29  ;;  %v441_v61 = vshrl.u32 %v897_v36, 16 }
  0x39   : > { %329 = vrot.lane.b32.xlu1 %v881_v60, %s1094_s29 }
  0x3c   : > { %335 = vrot.lane.b32.xlu0 %v884_v63, %s1094_s29 }
  0x3d   : > { %337 = vrot.lane.b32.xlu1 %v885_v62, %s1094_s29  ;;  %v445_v62 = vrot.slane %v443_v55, 1 }
  0x3f   : > { %v446_v9 = vor.u32 %v445_v62, %v441_v61 }
  0x40   : > { %339 = vrot.lane.b32.xlu0 %v249_v38, %s1096_s4  ;;  %v869_v38 = vld [vmem:[%s1174_s28 + $0x44] sm:$0x1]  ;;  %s786_s28 = sshll.u32 %s1371_s26, 4  ;;  %s1390_s28 = int_to_ptr.vmem [resolvable:$true] %s786_s28 }
  0x41   : > { %341 = vrot.lane.b32.xlu1 %v256_v45, %s1096_s4  ;;  %v431_v45 = vrot.slane %v429_v34, 1  ;;  %v901_v49 = vcombine.low %v861_v27, %v869_v38  ;;  %s1030_s6 = scalar_lea.vmem %s1390_s28, 512  ;;  %p1037_p0 = scmp.lt.s32.totalorder %s1390_s28, %s1035_s8 }
  0x42   : > { %p1031_p11 = scmp.ne.s32.totalorder %s1390_s28, %s1030_s6  ;;  %p1038_p1 = scmp.lt.s32.totalorder %s1036_s9, %s1030_s6 }
  0x43   : > { %v471_v4 = vshll.u32 %v901_v49, 16 }
  0x44   : > { %347 = vrot.lane.b32.xlu0 %v277_v37, %s1096_s4  ;;  %v896_v37 = vcombine.low %v856_v22, %v864_v26  ;;  %p1032_p12 = pnand %p1031_p11, %p1159_p5  ;;  %p1039_p2 = por %p1038_p1, %p1037_p0 }
  0x45   : > { %349 = vrot.lane.b32.xlu1 %v284_v44, %s1096_s4  ;;  %v1029_v44 = vld [vmem:[%s1443_s1 + $0x10] ss:$0 sps:$4 sm:$0x33]   ;;  %v473_v12 = vrot.slane %v471_v4, 1 }
  0x46   : > { %947 = vmatprep.subr.msk.bf16.mxu0 %vm662_vm0, %v1029_v44  ;;  %948 = vmatprep.subr.msk.bf16.mxu1 %vm662_vm0, %v1029_v44  ;;  %v664_v51 = vsel %vm662_vm0, %v1029_v44, 0  ;;  %v436_v59 = vshll.u32 %v896_v37, 16  ;;  %v434_v63 = vshrl.u32 %v896_v37, 16  ;;  %p1033_p13 = pneg %p1032_p12 }
  0x47   : > { %932 = vmatpush3.bf16.msra.mxu0 %v664_v51  ;;  %946 = vmatpush3.bf16.msra.mxu1 %v664_v51 }
  0x48   : > { %343 = vrot.lane.b32.xlu0 %v263_v52, %s1096_s4  ;;  %v455_v52 = vshrl.u32 %v899_v24, 16  ;;  %v438_v3 = vrot.slane %v436_v59, 1  ;;  %p1040_p3 = pnand %p1039_p2, %p1033_p13 }
  0x49   : > { %345 = vrot.lane.b32.xlu1 %v270_v50, %s1096_s4  ;;  %v900_v50 = vcombine.low %v860_v32, %v868_v40 }
  0x4a   : > { %v460_v60 = vor.u32 %v459_v53, %v455_v52  ;;  %v439_v10 = vor.u32 %v438_v3, %v434_v63 }
  0x4b   : > { %v462_v8 = vshrl.u32 %v900_v50, 16 }
  0x4c   : > { %351 = vrot.lane.b32.xlu0 %v291_v57, %s1096_s4  ;;  %v425_v57 = vor.u32 %v424_v47, %v420_v46 }
  0x4d   : > { %353 = vrot.lane.b32.xlu1 %v298_v56, %s1096_s4  ;;  %v432_v56 = vor.u32 %v431_v45, %v427_v42 }
  0x50   : > { %379 = vrot.lane.b32.xlu0 %v886_v6, %s1097_s5  ;;  %v469_v6 = vshrl.u32 %v901_v49, 16 }
  0x51   : > { %381 = vrot.lane.b32.xlu1 %v887_v5, %s1097_s5  ;;  %v464_v5 = vshll.u32 %v900_v50, 16 }
  0x52   : > { %v474_v15 = vor.u32 %v473_v12, %v469_v6 }
  0x53   : > { %v466_v14 = vrot.slane %v464_v5, 1 }
  0x54   : > { %387 = vrot.lane.b32.xlu0 %v890_v19, %s1097_s5 }
  0x55   : > { %389 = vrot.lane.b32.xlu1 %v891_v16, %s1097_s5  ;;  %v467_v16 = vor.u32 %v466_v14, %v462_v8 }
  0x58   : > { %383 = vrot.lane.b32.xlu0 %v888_v31, %s1097_s5 }
  0x59   : > { %385 = vrot.lane.b32.xlu1 %v889_v30, %s1097_s5 }
  0x5c   : > { %391 = vrot.lane.b32.xlu0 %v892_v41, %s1097_s5 }
  0x5d   : > { %393 = vrot.lane.b32.xlu1 %v893_v39, %s1097_s5  ;;  %s1400_s5 = scalar_lea.sflag [#allocation3], %s161_s24 }
  0x60   : > { %475 = vrot.lane.b32.xlu0 %v425_v57, %s1098_s17 }
  0x61   : > { %477 = vrot.lane.b32.xlu1 %v432_v56, %s1098_s17 }
  0x64   : > { %483 = vrot.lane.b32.xlu0 %v453_v1, %s1098_s17 }
  0x65   : > { %485 = vrot.lane.b32.xlu1 %v460_v60, %s1098_s17 }
  0x68   : > { %479 = vrot.lane.b32.xlu0 %v439_v10, %s1098_s17 }
  0x69   : > { %481 = vrot.lane.b32.xlu1 %v446_v9, %s1098_s17 }
  0x6c   : > { %487 = vrot.lane.b32.xlu0 %v467_v16, %s1098_s17 }
  0x6d   : > { %489 = vrot.lane.b32.xlu1 %v474_v15, %s1098_s17 }
  0x8f   : > { %v326_v17 = vpop.permute.xlu1 %325  ;;  %v324_v19 = vpop.permute.xlu0 %323 }
  0x96   : > { %v300_v21 = vpop.permute.xlu0 %299 }
  0x97   : > { %v308_v20 = vpop.permute.xlu1 %307  ;;  %v501_v48 = vsel %vm499_vm1, %v1181_v2, %v300_v21 }
  0x98   : > { %v518_v50 = vsel %vm516_vm2, %v501_v48, %v324_v19  ;;  %v509_v54 = vsel %vm499_vm1, %v1190_v7, %v308_v20 }
  0x99   : > { %v534_v56 = vsel %vm533_vm3, %v518_v50, %v324_v19 }
  0x9a   : > { %v302_v23 = vpop.permute.xlu0 %301 }
  0x9b   : > { %v310_v22 = vpop.permute.xlu1 %309  ;;  %v503_v49 = vsel %vm499_vm1, %v1177_v0, %v302_v23 }
  0x9c   : > { %v520_v51 = vsel %vm516_vm2, %v503_v49, %v326_v17  ;;  %v511_v55 = vsel %vm499_vm1, %v1196_v11, %v310_v22 }
  0x9d   : > { %v535_v2 = vsel %vm533_vm3, %v520_v51, %v326_v17 }
  0x9e   : > { %v304_v25 = vpop.permute.xlu0 %303 }
  0x9f   : > { %v306_v24 = vpop.permute.xlu1 %305  ;;  %v505_v63 = vsel %vm499_vm1, %v1207_v18, %v304_v25 }
  0xa0   : > { %v507_v11 = vsel %vm499_vm1, %v1200_v13, %v306_v24 }
  0xa2   : > { %v1279_v27 = vpop.permute.xlu0 %311 }
  0xa3   : > { %v1277_v26 = vpop.permute.xlu1 %313  ;;  %v513_v19 = vsel %vm499_vm1, %v1217_v33, %v1279_v27 }
  0xa4   : > { %v515_v17 = vsel %vm499_vm1, %v1212_v28, %v1277_v26 }
  0xa6   : > { %v332_v30 = vpop.permute.xlu0 %331 }
  0xa7   : > { %v334_v29 = vpop.permute.xlu1 %333  ;;  %v526_v57 = vsel %vm516_vm2, %v509_v54, %v332_v30 }
  0xa8   : > { %v528_v0 = vsel %vm516_vm2, %v511_v55, %v334_v29  ;;  %v538_v3 = vsel %vm533_vm3, %v526_v57, %v332_v30 }
  0xa9   : > { %v539_v1 = vsel %vm533_vm3, %v528_v0, %v334_v29 }
  0xaa   : > { %v328_v32 = vpop.permute.xlu0 %327 }
  0xab   : > { %v330_v31 = vpop.permute.xlu1 %329  ;;  %v522_v5 = vsel %vm516_vm2, %v505_v63, %v328_v32 }
  0xac   : > { %v524_v4 = vsel %vm516_vm2, %v507_v11, %v330_v31  ;;  %v536_v22 = vsel %vm533_vm3, %v522_v5, %v328_v32 }
  0xad   : > { %v537_v21 = vsel %vm533_vm3, %v524_v4, %v330_v31 }
  0xae   : > { %v1283_v35 = vpop.permute.xlu0 %335 }
  0xaf   : > { %v1281_v34 = vpop.permute.xlu1 %337  ;;  %v530_v24 = vsel %vm516_vm2, %v513_v19, %v1283_v35 }
  0xb0   : > { %v532_v23 = vsel %vm516_vm2, %v515_v17, %v1281_v34 }
  0xb2   : > { %v340_v37 = vpop.permute.xlu0 %339 }
  0xb3   : > { %v342_v36 = vpop.permute.xlu1 %341  ;;  %v544_v59 = vsel %vm542_vm4, %v534_v56, %v340_v37 }
  0xb4   : > { %v546_v58 = vsel %vm542_vm4, %v535_v2, %v342_v36  ;;  %v902_v2 = vld [vmem:[%s1444_s2] ss:$0 sm:$0xff] }
  0xb6   : > { %v348_v39 = vpop.permute.xlu0 %347 }
  0xb7   : > { %v350_v38 = vpop.permute.xlu1 %349  ;;  %v552_v8 = vsel %vm542_vm4, %v538_v3, %v348_v39  ;;  %v540_v39 = vsel %vm533_vm3, %v530_v24, %v1283_v35 }
  0xb8   : > { %v554_v6 = vsel %vm542_vm4, %v539_v1, %v350_v38  ;;  %v541_v38 = vsel %vm533_vm3, %v532_v23, %v1281_v34 }
  0xba   : > { %v344_v41 = vpop.permute.xlu0 %343 }
  0xbb   : > { %v346_v40 = vpop.permute.xlu1 %345  ;;  %v548_v29 = vsel %vm542_vm4, %v536_v22, %v344_v41 }
  0xbc   : > { %v550_v25 = vsel %vm542_vm4, %v537_v21, %v346_v40 }
  0xbe   : > { %v1287_v43 = vpop.permute.xlu0 %351 }
  0xbf   : > { %v1285_v42 = vpop.permute.xlu1 %353  ;;  %v556_v41 = vsel %vm542_vm4, %v540_v39, %v1287_v43 }
  0xc0   : > { %v558_v40 = vsel %vm542_vm4, %v541_v38, %v1285_v42 }
  0xc2   : > { %v380_v45 = vpop.permute.xlu0 %379 }
  0xc3   : > { %v382_v44 = vpop.permute.xlu1 %381  ;;  %v561_v62 = vsel %vm559_vm5, %v544_v59, %v380_v45 }
  0xc4   : > { %v563_v7 = vsel %vm559_vm5, %v546_v58, %v382_v44  ;;  %v577_v13 = vsel %vm576_vm6, %v561_v62, %v380_v45 }
  0xc5   : > { %v578_v9 = vsel %vm576_vm6, %v563_v7, %v382_v44 }
  0xc6   : > { %v388_v47 = vpop.permute.xlu0 %387 }
  0xc7   : > { %v390_v46 = vpop.permute.xlu1 %389  ;;  %v569_v14 = vsel %vm559_vm5, %v552_v8, %v388_v47 }
  0xc8   : > { %v571_v12 = vsel %vm559_vm5, %v554_v6, %v390_v46  ;;  %v581_v26 = vsel %vm576_vm6, %v569_v14, %v388_v47 }
  0xc9   : > { %v582_v28 = vsel %vm576_vm6, %v571_v12, %v390_v46 }
  0xca   : > { %v384_v53 = vpop.permute.xlu0 %383 }
  0xcb   : > { %v386_v52 = vpop.permute.xlu1 %385  ;;  %v565_v31 = vsel %vm559_vm5, %v548_v29, %v384_v53 }
  0xcc   : > { %v567_v30 = vsel %vm559_vm5, %v550_v25, %v386_v52  ;;  %v579_v45 = vsel %vm576_vm6, %v565_v31, %v384_v53 }
  0xcd   : > { %v580_v44 = vsel %vm576_vm6, %v567_v30, %v386_v52 }
  0xce   : > { %v392_v61 = vpop.permute.xlu0 %391 }
  0xcf   : > { %v394_v60 = vpop.permute.xlu1 %393  ;;  %v573_v48 = vsel %vm559_vm5, %v556_v41, %v392_v61 }
  0xd0   : > { %v575_v34 = vsel %vm559_vm5, %v558_v40, %v394_v60  ;;  %v583_v50 = vsel %vm576_vm6, %v573_v48, %v392_v61 }
  0xd1   : > { %v584_v43 = vsel %vm576_vm6, %v575_v34, %v394_v60 }
  0xd2   : > { %v476_v18 = vpop.permute.xlu0 %475 }
  0xd3   : > { %v478_v10 = vpop.permute.xlu1 %477  ;;  %v587_v16 = vsel %vm585_vm7, %v577_v13, %v476_v18 }
  0xd4   : > { %v589_v15 = vsel %vm585_vm7, %v578_v9, %v478_v10 }
  0xd5   : > { %v903_v20 = vcombine.low %v587_v16, %v589_v15 }
  0xd6   : > { %v484_v27 = vpop.permute.xlu0 %483 }
  0xd7   : > { %v486_v33 = vpop.permute.xlu1 %485  ;;  %933 = vmatprep.mubr.msk.bf16.mxu0 %vm649_vm8, %v903_v20  ;;  %v595_v36 = vsel %vm585_vm7, %v581_v26, %v484_v27 }
  0xd8   : > { %v597_v32 = vsel %vm585_vm7, %v582_v28, %v486_v33 }
  0xd9   : > { %v905_v37 = vcombine.low %v595_v36, %v597_v32 }
  0xda   : > { %v480_v47 = vpop.permute.xlu0 %479 }
  0xdb   : > { %v482_v46 = vpop.permute.xlu1 %481  ;;  %937 = vmatprep.mubr.msk.bf16.mxu1 %vm649_vm8, %v905_v37  ;;  %v591_v42 = vsel %vm585_vm7, %v579_v45, %v480_v47 }
  0xdc   : > { %v593_v35 = vsel %vm585_vm7, %v580_v44, %v482_v46 }
  0xdd   : > { %v904_v49 = vcombine.low %v591_v42, %v593_v35 }
  0xde   : > { %v488_v52 = vpop.permute.xlu0 %487 }
  0xdf   : > { %v490_v51 = vpop.permute.xlu1 %489  ;;  %934 = vmatmul.mubr.msk.bf16.vlgmr.msra.gmra.mrb[0].mxu0 %vm649_vm8, %v904_v49  ;;  %v599_v54 = vsel %vm585_vm7, %v583_v50, %v488_v52 }
  0xe0   : > { %v601_v53 = vsel %vm585_vm7, %v584_v43, %v490_v51 }
  0xe1   : > { %v906_v55 = vcombine.low %v599_v54, %v601_v53 }
  0xe3   : > { %938 = vmatmul.mubr.msk.bf16.vlgmr.msra.gmra.mrb[0].mxu1 %vm649_vm8, %v906_v55 }
 0x1b2   : > { %v935_v56 = vpop.f32.mrb[0].mxu0 }
 0x1b3   : > { %v709_v0 = vadd.f32 %v935_v56, %v902_v2  ;;  %v700_v57 = vpop.f32.mrb[1].mxu0 }
 0x1b4   : > { %v701_v58 = vadd.f32 %v902_v2, %v700_v57  ;;  %v936_v59 = vpop.f32.mrb[2].mxu0 }
 0x1b5   : > { %vm733_vm9 = vcmp.gt.f32.partialorder %v709_v0, 0.0  ;;  %v741_v60 = vmul.f32 0.2, %v709_v0  ;;  %v712_v61 = vadd.f32 %v936_v59, %v902_v2  ;;  %v703_v7 = vpop.f32.mrb[3].mxu0 }
 0x1b6   : > { %vm731_vm11 = vcmp.gt.f32.partialorder %v701_v58, 0.0  ;;  %v739_v62 = vmul.f32 0.2, %v701_v58  ;;  %v704_v11 = vadd.f32 %v902_v2, %v703_v7  ;;  %v939_v63 = vpop.f32.mrb[0].mxu1 }
 0x1b7   : > { %v749_v1 = vsel %vm733_vm9, %v709_v0, %v741_v60  ;;  %vm734_vm12 = vcmp.gt.f32.partialorder %v712_v61, 0.0  ;;  %v742_v3 = vmul.f32 0.2, %v712_v61  ;;  %v725_v4 = vadd.f32 %v939_v63, %v902_v2  ;;  %v716_v5 = vpop.f32.mrb[1].mxu1 }
 0x1b8   : > { %v757_v6 = vpack.c.bf16 %v749_v1, %v749_v1  ;;  %v747_v8 = vsel %vm731_vm11, %v701_v58, %v739_v62  ;;  %vm732_vm13 = vcmp.gt.f32.partialorder %v704_v11, 0.0  ;;  %v740_v9 = vmul.f32 0.2, %v704_v11  ;;  %v940_v13 = vpop.f32.mrb[2].mxu1 }
 0x1b9   : > { %v755_v10 = vpack.c.bf16 %v747_v8, %v747_v8  ;;  %v750_v18 = vsel %vm734_vm12, %v712_v61, %v742_v3  ;;  %vm737_vm14 = vcmp.gt.f32.partialorder %v725_v4, 0.0  ;;  %v745_v12 = vmul.f32 0.2, %v725_v4  ;;  %v719_v14 = vpop.f32.mrb[3].mxu1 }
 0x1ba   : > { %766 = vst.msk [vmem:[%s1371_s26 + $0x8] sm:$0xf] %vm763_vm10, %v757_v6  ;;  %v758_v15 = vpack.c.bf16 %v750_v18, %v750_v18  ;;  %v748_v16 = vsel %vm732_vm13, %v704_v11, %v740_v9  ;;  %v717_v17 = vadd.f32 %v902_v2, %v716_v5  ;;  %v728_v19 = vadd.f32 %v940_v13, %v902_v2 }
 0x1bb   : > { %764 = vst.msk [vmem:[%s1371_s26] sm:$0xf] %vm763_vm10, %v755_v10  ;;  %v756_v20 = vpack.c.bf16 %v748_v16, %v748_v16  ;;  %v753_v21 = vsel %vm737_vm14, %v725_v4, %v745_v12  ;;  %v720_v22 = vadd.f32 %v902_v2, %v719_v14 }
 0x1bc   : > { %767 = vst.msk [vmem:[%s1371_s26 + $0xc] sm:$0xf] %vm763_vm10, %v758_v15  ;;  %v761_v23 = vpack.c.bf16 %v753_v21, %v753_v21  ;;  %vm735_vm15 = vcmp.gt.f32.partialorder %v717_v17, 0.0  ;;  %v743_v24 = vmul.f32 0.2, %v717_v17  ;;  %vm738_vm0 = vcmp.gt.f32.partialorder %v728_v19, 0.0 }
 0x1bd   : > { %765 = vst.msk [vmem:[%s1371_s26 + $0x4] sm:$0xf] %vm763_vm10, %v756_v20  ;;  %v746_v25 = vmul.f32 0.2, %v728_v19  ;;  %vm736_vm1 = vcmp.gt.f32.partialorder %v720_v22, 0.0 }
 0x1be   : > { %v744_v29 = vmul.f32 0.2, %v720_v22  ;;  %770 = vst.msk [vmem:[%s1371_s26 + $0x18] sm:$0xf] %vm763_vm10, %v761_v23  ;;  %v751_v28 = vsel %vm735_vm15, %v717_v17, %v743_v24 }
 0x1bf   : > { %v759_v26 = vpack.c.bf16 %v751_v28, %v751_v28  ;;  %v754_v33 = vsel %vm738_vm0, %v728_v19, %v746_v25 }
 0x1c0   : > { %v752_v27 = vsel %vm736_vm1, %v720_v22, %v744_v29  ;;  %v762_v30 = vpack.c.bf16 %v754_v33, %v754_v33 }
 0x1c1   : > { %v760_v31 = vpack.c.bf16 %v752_v27, %v752_v27  ;;  %768 = vst.msk [vmem:[%s1371_s26 + $0x10] sm:$0xf] %vm763_vm10, %v759_v26 }
 0x1c2   : > { %771 = vst.msk [vmem:[%s1371_s26 + $0x1c] sm:$0xf] %vm763_vm10, %v762_v30 }
 0x1c3   : > { %769 = vst.msk [vmem:[%s1371_s26 + $0x14] sm:$0xf] %vm763_vm10, %v760_v31 }
 0x1c4   : > { %1043 = shalt.err (!%p1040_p3)
}
 0x1c5   : > { %s1044_s10 = scalar_lea.hbm %s1388_s16, 512  ;;  %s1048_s19 = scalar_lea.hbm %s1445_s3, 1024 }
 0x1c6   : > { %p1045_p4 = scmp.ne.s32.totalorder %s1388_s16, %s1044_s10  ;;  %p1049_p9 = scmp.lt.u32.totalorder %s1388_s16, %s1445_s3 }
 0x1c7   : > { %p1050_p10 = scmp.lt.u32.totalorder %s1048_s19, %s1044_s10  ;;  %p1052_p12 = scmp.lt.u32.totalorder %s1044_s10, %s1388_s16 }
 0x1c8   : > { %p1046_p7 = pnand %p1045_p4, %p1159_p5 }
 0x1c9   : > { %p1051_p11 = por %p1050_p10, %p1049_p9 }
 0x1ca   : > { %p1047_p8 = pneg %p1046_p7 }
 0x1cb   : > { %p1053_p13 = por %p1052_p12, %p1051_p11 }
 0x1cd   : > { %p1054_p0 = pnand %p1053_p13, %p1047_p8 }
 0x1cf   : > { %1057 = shalt.err (!%p1054_p0)
}
 0x1d0   : > { %s1100_s25 = smov 64  }
 0x1d1   : > { %950 = dma.vmem_to_hbm [thread:$0]  (%p1159_p5), %s1390_s28, 512, %s1388_s16, %s1400_s5, %s1100_s25, %s1100_s25, %s1094_s29  }
 0x1d2 PF: > { %p956_p1 = scmp.ge.s32.totalorder %s1092_s15, 2  ;;  %s801_s26 = sand.u32 1, %s1080_s12  }
 0x1d3   : > { %s802_s27 = scalar_lea.sflag [#allocation3], %s801_s26 }
 0x1d4   : > { %p953_p2 = pnand %p956_p1, %p1163_p6 }
 0x1d6   : > { %1075 = dma.done.wait (!%p953_p2), %s802_s27, 512  }
 0x1d7   : > { %1077 = vsyncadd (!%p953_p2), %s802_s27, 4294966784  ;;  %p13_p3 = scmp.ge.s32.totalorder %s1146_s18, 4   ;;  %s1448_s12 = smov %s1084_s13 }
 0x1d8   : > { %s1449_s13 = smov %s1088_s14  ;;  %s1450_s14 = smov %s1157_s21 }
 0x1d9   : > { %s1451_s15 = smov %s1146_s18  ;;  %15 = sbr.rel (!%p13_p3) target bundleno = 3 (0x3), region = 68 }
 0x1e0   :  { %807 = vsyncpa [#allocation3], 1 }
 0x1e1   :  { %809 = vsyncpa [#allocation3 + $0x1], 1 }

</bundles_post_ra>
